<compile_context>
chip_gen: v5e
topology: v5e:2x2
jax: 0.10.0
libtpu: 0.0.40
codegen_flags: <defaults>
</compile_context>

<pallas_src>
import functools

import jax
import jax.numpy as jnp
import numpy as np
from jax import lax
from jax.experimental import pallas as pl
from jax.experimental.pallas import tpu as pltpu


def _output_layer_kernel(x_ref, uw_ref, fw_ref, fb_ref, tgt_ref,
                         y_ref, lpe_ref, *, matmul_dtype):
    BT, L, D = x_ref.shape
    TC = uw_ref.shape[0]

    # Fold (BT, L) into one sublane slab so both contractions are single large
    # MXU matmuls with the class tile lane-dense on the output.
    x2 = x_ref[...].reshape(BT * L, D).astype(matmul_dtype)      # (BT*L, D)
    uw = uw_ref[...].astype(matmul_dtype)                        # (TC, D)
    fw = fw_ref[...].astype(matmul_dtype)                        # (TC, D)

    dn = (((1,), (1,)), ((), ()))      # contract over D
    s = lax.dot_general(x2, uw, dn, preferred_element_type=jnp.float32)  # (BT*L, TC)
    p = lax.dot_general(x2, fw, dn, preferred_element_type=jnp.float32)  # (BT*L, TC)

    s = s.reshape(BT, L, TC)
    p = p.reshape(BT, L, TC)

    # Softmax over the sequence axis with deferred normalization:
    #   y = (sum_l e * P) / (sum_l e) + bias
    # TODO(synk): for very large L*TC tiles (where (BT, L, TC) no longer fits
    # scoped VMEM, esp. on v7x's 64 MiB) add an inner L-tile loop with an
    # online-softmax running max / denominator.
    s_max = jnp.max(s, axis=1, keepdims=True)                    # (BT, 1, TC)
    e = jnp.exp(s - s_max)                                       # (BT, L, TC)
    denom = jnp.sum(e, axis=1)                                   # (BT, TC)
    num = jnp.sum(e * p, axis=1)                                 # (BT, TC)

    y = num / denom + fb_ref[...]                                # (BT, TC), lane-dense
    y_ref[...] = y.astype(y_ref.dtype)

    # Numerically stable BCE-with-logits per element; mean reduction in wrapper.
    t = tgt_ref[...].astype(jnp.float32)
    lpe_ref[...] = (jnp.maximum(y, 0.0) - y * t
                    + jnp.log1p(jnp.exp(-jnp.abs(y)))).astype(lpe_ref.dtype)


def output_layer_forward(x, target, U_w, final_w, final_b, *,
                         block_b=8, block_c=128, matmul_dtype=None):
    """(y, loss) == OutputLayer.forward(x, target, _) for weights U_w/final_w/final_b."""
    B, L, D = x.shape
    C = U_w.shape[0]
    if matmul_dtype is None:
        matmul_dtype = x.dtype

    # Batch blocking (BT rows / step) and class blocking (TC classes / step).
    BT = min(B, block_b)
    nb = pl.cdiv(B, BT)
    Bp = nb * BT
    TC = min(C, block_c)
    nc = pl.cdiv(C, TC)
    Cp = nc * TC

    # Pad so every block is full; padded rows/classes are independent per-tile
    # work and are sliced off before the mean.
    if Bp != B:
        x = jnp.pad(x, ((0, Bp - B), (0, 0), (0, 0)))
        target = jnp.pad(target, ((0, Bp - B), (0, 0)))
    if Cp != C:
        U_w = jnp.pad(U_w, ((0, Cp - C), (0, 0)))
        final_w = jnp.pad(final_w, ((0, Cp - C), (0, 0)))
        final_b = jnp.pad(final_b, ((0, Cp - C),))
        target = jnp.pad(target, ((0, 0), (0, Cp - C)))

    fb2 = final_b.reshape(1, Cp).astype(jnp.float32)   # lane-dense bias row
    tgt = target.astype(jnp.float32)

    kernel = functools.partial(_output_layer_kernel, matmul_dtype=matmul_dtype)

    y, lpe = pl.pallas_call(
        kernel,
        out_shape=(
            jax.ShapeDtypeStruct((Bp, Cp), jnp.float32),   # logits y
            jax.ShapeDtypeStruct((Bp, Cp), jnp.float32),   # per-element BCE values
        ),
        grid_spec=pltpu.PrefetchScalarGridSpec(
            num_scalar_prefetch=0,
            # class axis innermost: the large x block keeps its index across the
            # inner sweep (no re-DMA), only the small weight tiles stream.
            grid=(nb, nc),
            in_specs=[
                pl.BlockSpec((BT, L, D), lambda b, c: (b, 0, 0)),   # x block
                pl.BlockSpec((TC, D), lambda b, c: (c, 0)),         # U.weight tile
                pl.BlockSpec((TC, D), lambda b, c: (c, 0)),         # final.weight tile
                pl.BlockSpec((1, TC), lambda b, c: (0, c)),         # final.bias tile
                pl.BlockSpec((BT, TC), lambda b, c: (b, c)),        # target tile
            ],
            out_specs=[
                pl.BlockSpec((BT, TC), lambda b, c: (b, c)),        # y tile
                pl.BlockSpec((BT, TC), lambda b, c: (b, c)),        # per-element loss tile
            ],
        ),
        compiler_params=pltpu.CompilerParams(
            # No carried accumulator -> both grid axes safely parallel.
            dimension_semantics=("parallel", "parallel"),
            vmem_limit_bytes=32 * 1024 * 1024,
        ),
    )(x, U_w, final_w, fb2, tgt)

    y = y[:B, :C]
    loss = jnp.mean(lpe[:B, :C])      # BCEWithLogitsLoss mean reduction
    return y, loss


def ref_forward(x, target, U_w, final_w, final_b):
    scores = jnp.einsum("cd,bld->bcl", U_w, x)
    alpha = jax.nn.softmax(scores, axis=2)
    m = jnp.einsum("bcl,bld->bcd", alpha, x)
    y = jnp.sum(final_w[None] * m, axis=2) + final_b[None]
    per = jnp.maximum(y, 0.0) - y * target + jnp.log1p(jnp.exp(-jnp.abs(y)))
    return y, jnp.mean(per)


if __name__ == "__main__":
    B, L, D, C = 2, 8, 32, 16   # batch, seq, input_size, class_nums

    key = jax.random.PRNGKey(0)
    kx, kt, ku, kf, kb = jax.random.split(key, 5)

    x = jax.random.normal(kx, (B, L, D), dtype=jnp.float32)
    target = jax.random.bernoulli(kt, 0.3, (B, C)).astype(jnp.float32)

    # xavier_uniform for the two weight matrices: U(-a, a), a = sqrt(6/(D+C))
    bound = float(np.sqrt(6.0 / (D + C)))
    U_w = jax.random.uniform(ku, (C, D), jnp.float32, -bound, bound)
    final_w = jax.random.uniform(kf, (C, D), jnp.float32, -bound, bound)
    # nn.Linear default bias init: U(-1/sqrt(fan_in), 1/sqrt(fan_in))
    bb = 1.0 / float(np.sqrt(D))
    final_b = jax.random.uniform(kb, (C,), jnp.float32, -bb, bb)

    y_ref, loss_ref = ref_forward(x, target, U_w, final_w, final_b)

    # f32 path (tight check).
    y, loss = output_layer_forward(x, target, U_w, final_w, final_b)
    jax.block_until_ready((y, loss))
    np.testing.assert_allclose(np.asarray(y), np.asarray(y_ref), rtol=1e-4, atol=1e-4)
    np.testing.assert_allclose(float(loss), float(loss_ref), rtol=1e-4, atol=1e-4)

    # bf16-MXU path with f32 accumulation (fast path on v6e/v7x); loose check.
    y_bf, loss_bf = output_layer_forward(x, target, U_w, final_w, final_b,
                                         matmul_dtype=jnp.bfloat16)
    jax.block_until_ready((y_bf, loss_bf))
    np.testing.assert_allclose(np.asarray(y_bf), np.asarray(y_ref), rtol=1e-1, atol=1e-1)
    np.testing.assert_allclose(float(loss_bf), float(loss_ref), rtol=1e-1, atol=1e-1)

    print("KERNEL_OK")
</pallas_src>

<mosaic_0001>
module attributes {stable_mosaic.version = 11 : i64} {
  func.func @_output_layer_kernel(%arg0: i32, %arg1: i32, %arg2: memref<2x8x32xf32, #tpu.memory_space<vmem>>, %arg3: memref<16x32xf32, #tpu.memory_space<vmem>>, %arg4: memref<16x32xf32, #tpu.memory_space<vmem>>, %arg5: memref<1x16xf32, #tpu.memory_space<vmem>>, %arg6: memref<2x16xf32, #tpu.memory_space<vmem>>, %arg7: memref<2x16xf32, #tpu.memory_space<vmem>>, %arg8: memref<2x16xf32, #tpu.memory_space<vmem>>) attributes {dimension_semantics = [#tpu.dimension_semantics<parallel>, #tpu.dimension_semantics<parallel>], iteration_bounds = array<i64: 1, 1>, scalar_prefetch = 0 : i64, scratch_operands = 0 : i64, tpu.core_type = #tpu.core_type<tc>, window_params = [{transform_indices = @transform_0, window_bounds = array<i64: 2, 8, 32>}, {transform_indices = @transform_1, window_bounds = array<i64: 16, 32>}, {transform_indices = @transform_2, window_bounds = array<i64: 16, 32>}, {transform_indices = @transform_3, window_bounds = array<i64: 1, 16>}, {transform_indices = @transform_4, window_bounds = array<i64: 2, 16>}, {transform_indices = @transform_5, window_bounds = array<i64: 2, 16>}, {transform_indices = @transform_6, window_bounds = array<i64: 2, 16>}]} {
    %c0 = arith.constant 0 : index
    %c0_0 = arith.constant 0 : index
    %c0_1 = arith.constant 0 : index
    %0 = vector.load %arg2[%c0, %c0_0, %c0_1] : memref<2x8x32xf32, #tpu.memory_space<vmem>>, vector<2x8x32xf32>
    %1 = vector.shape_cast %0 : vector<2x8x32xf32> to vector<16x32xf32>
    %c0_2 = arith.constant 0 : index
    %c0_3 = arith.constant 0 : index
    %2 = vector.load %arg3[%c0_2, %c0_3] : memref<16x32xf32, #tpu.memory_space<vmem>>, vector<16x32xf32>
    %c0_4 = arith.constant 0 : index
    %c0_5 = arith.constant 0 : index
    %3 = vector.load %arg4[%c0_4, %c0_5] : memref<16x32xf32, #tpu.memory_space<vmem>>, vector<16x32xf32>
    %cst = arith.constant dense<0.000000e+00> : vector<16x16xf32>
    %4 = tpu.matmul %1, %2, %cst {dimension_numbers = #tpu.dot_dimension_numbers<[1], [1], [0], [0], [0, 0, 1, 0], [], []>} : vector<16x32xf32>, vector<16x32xf32>, vector<16x16xf32> -> vector<16x16xf32>
    %cst_6 = arith.constant dense<0.000000e+00> : vector<16x16xf32>
    %5 = tpu.matmul %1, %3, %cst_6 {dimension_numbers = #tpu.dot_dimension_numbers<[1], [1], [0], [0], [0, 0, 1, 0], [], []>} : vector<16x32xf32>, vector<16x32xf32>, vector<16x16xf32> -> vector<16x16xf32>
    %6 = vector.shape_cast %4 : vector<16x16xf32> to vector<2x8x16xf32>
    %7 = vector.shape_cast %5 : vector<16x16xf32> to vector<2x8x16xf32>
    %cst_7 = arith.constant dense<0xFF800000> : vector<2x16xf32>
    %8 = vector.multi_reduction <maximumf>, %6, %cst_7 [1] : vector<2x8x16xf32> to vector<2x16xf32>
    %9 = vector.shape_cast %8 : vector<2x16xf32> to vector<2x1x16xf32>
    %10 = vector.broadcast %9 : vector<2x1x16xf32> to vector<2x8x16xf32>
    %11 = arith.subf %6, %10 : vector<2x8x16xf32>
    %12 = math.exp %11 : vector<2x8x16xf32>
    %cst_8 = arith.constant dense<0.000000e+00> : vector<2x16xf32>
    %13 = vector.multi_reduction <add>, %12, %cst_8 [1] : vector<2x8x16xf32> to vector<2x16xf32>
    %14 = arith.mulf %12, %7 : vector<2x8x16xf32>
    %cst_9 = arith.constant dense<0.000000e+00> : vector<2x16xf32>
    %15 = vector.multi_reduction <add>, %14, %cst_9 [1] : vector<2x8x16xf32> to vector<2x16xf32>
    %16 = arith.divf %15, %13 : vector<2x16xf32>
    %c0_10 = arith.constant 0 : index
    %c0_11 = arith.constant 0 : index
    %17 = vector.load %arg5[%c0_10, %c0_11] : memref<1x16xf32, #tpu.memory_space<vmem>>, vector<1x16xf32>
    %18 = vector.broadcast %17 : vector<1x16xf32> to vector<2x16xf32>
    %19 = arith.addf %16, %18 : vector<2x16xf32>
    %c0_12 = arith.constant 0 : index
    %c0_13 = arith.constant 0 : index
    %20 = vector.load %arg7[%c0_12, %c0_13] : memref<2x16xf32, #tpu.memory_space<vmem>>, vector<2x16xf32>
    tpu.vector_store %arg7[%c0_12, %c0_13], %19 {strides = array<i32>} : memref<2x16xf32, #tpu.memory_space<vmem>>, vector<2x16xf32>,
    %c0_14 = arith.constant 0 : index
    %c0_15 = arith.constant 0 : index
    %21 = vector.load %arg6[%c0_14, %c0_15] : memref<2x16xf32, #tpu.memory_space<vmem>>, vector<2x16xf32>
    %cst_16 = arith.constant 0.000000e+00 : f32
    %22 = vector.broadcast %cst_16 : f32 to vector<2x16xf32>
    %23 = arith.maximumf %19, %22 : vector<2x16xf32>
    %24 = arith.mulf %19, %21 : vector<2x16xf32>
    %25 = arith.subf %23, %24 : vector<2x16xf32>
    %26 = math.absf %19 : vector<2x16xf32>
    %cst_17 = arith.constant 0.000000e+00 : f32
    %27 = vector.broadcast %cst_17 : f32 to vector<2x16xf32>
    %28 = arith.subf %27, %26 : vector<2x16xf32>
    %29 = math.exp %28 : vector<2x16xf32>
    %30 = math.log1p %29 : vector<2x16xf32>
    %31 = arith.addf %25, %30 : vector<2x16xf32>
    %c0_18 = arith.constant 0 : index
    %c0_19 = arith.constant 0 : index
    %32 = vector.load %arg8[%c0_18, %c0_19] : memref<2x16xf32, #tpu.memory_space<vmem>>, vector<2x16xf32>
    tpu.vector_store %arg8[%c0_18, %c0_19], %31 {strides = array<i32>} : memref<2x16xf32, #tpu.memory_space<vmem>>, vector<2x16xf32>,
    return
  }
  func.func @transform_0(%arg0: i32, %arg1: i32) -> (i32, i32, i32) {
    %c0_i32 = arith.constant 0 : i32
    %c0_i32_0 = arith.constant 0 : i32
    %c0_i32_1 = arith.constant 0 : i32
    return %arg0, %c0_i32, %c0_i32_0 : i32, i32, i32
  }
  func.func @transform_1(%arg0: i32, %arg1: i32) -> (i32, i32) {
    %c0_i32 = arith.constant 0 : i32
    %c0_i32_0 = arith.constant 0 : i32
    return %arg1, %c0_i32 : i32, i32
  }
  func.func @transform_2(%arg0: i32, %arg1: i32) -> (i32, i32) {
    %c0_i32 = arith.constant 0 : i32
    %c0_i32_0 = arith.constant 0 : i32
    return %arg1, %c0_i32 : i32, i32
  }
  func.func @transform_3(%arg0: i32, %arg1: i32) -> (i32, i32) {
    %c0_i32 = arith.constant 0 : i32
    %c0_i32_0 = arith.constant 0 : i32
    return %c0_i32, %arg1 : i32, i32
  }
  func.func @transform_4(%arg0: i32, %arg1: i32) -> (i32, i32) {
    %c0_i32 = arith.constant 0 : i32
    return %arg0, %arg1 : i32, i32
  }
  func.func @transform_5(%arg0: i32, %arg1: i32) -> (i32, i32) {
    %c0_i32 = arith.constant 0 : i32
    return %arg0, %arg1 : i32, i32
  }
  func.func @transform_6(%arg0: i32, %arg1: i32) -> (i32, i32) {
    %c0_i32 = arith.constant 0 : i32
    return %arg0, %arg1 : i32, i32
  }
}

</mosaic_0001>

<bundles_post_ra>
// kernel: tpu_custom_call.1
= control target key start
LH: loop header
LB: loop body
LE: loop exit
PB: predicated region body
PF: predicated region fallthrough
CT: control target
= control target key end

     0   :  { %12 = vsyncpa [#allocation3], 0  ;;  %s565_s0 = inlined_call_operand.hbm [shape: f32[2,8,32], index: 0, kind: input, shape index: {}]   ;;  %s566_s1 = inlined_call_operand.hbm [shape: f32[16,32], index: 1, kind: input, shape index: {}]   ;;  %s567_s2 = inlined_call_operand.hbm [shape: f32[16,32], index: 2, kind: input, shape index: {}]   ;;  %s568_s3 = inlined_call_operand.vmem [shape: f32[1,16], index: 3, kind: input, shape index: {}]   ;;  %s569_s4 = inlined_call_operand.vmem [shape: f32[2,16], index: 4, kind: input, shape index: {}]   ;;  %s570_s5 = inlined_call_operand.hbm [shape: f32[2,16], index: 5, kind: output, shape index: {0}]   ;;  %s571_s6 = inlined_call_operand.hbm [shape: f32[2,16], index: 6, kind: output, shape index: {1}]  }
   0x1   :  { %13 = vsyncpa [#allocation6], 0 }
   0x2   :  { %14 = vsyncpa [#allocation4], 0 }
   0x3   :  { %15 = vsyncpa [#allocation10], 0  ;;  %s33_s23 = sshll.u32 %s566_s1, 4  ;;  %s480_s24 = smov [#allocation5]   ;;  %s34_s23 = int_to_ptr.hbm [resolvable:$true] %s33_s23 }
   0x4   :  { %s35_s25 = sshll.u32 %s480_s24, 4  ;;  %s20_s28 = sshll.u32 %s565_s0, 4  ;;  %s36_s25 = int_to_ptr.vmem [resolvable:$true] %s35_s25  ;;  %s21_s28 = int_to_ptr.hbm [resolvable:$true] %s20_s28 }
   0x5   :  { %s481_s29 = smov 128   ;;  %s482_s30 = smov 8  }
   0x6   :  { %41 = dma.hbm_to_vmem [thread:$0]  %s34_s23, 256, %s36_s25, [#allocation6], %s481_s29, %s481_s29, %s482_s30  }
   0x7   :  { %s483_s7 = smov [#allocation2]   ;;  %s46_s11 = sshll.u32 %s567_s2, 4  ;;  %s47_s11 = int_to_ptr.hbm [resolvable:$true] %s46_s11 }
   0x8   :  { %s22_s8 = sshll.u32 %s483_s7, 4  ;;  %s484_s1 = smov [#allocation7]   ;;  %s23_s8 = int_to_ptr.vmem [resolvable:$true] %s22_s8 }
   0x9   :  { %28 = dma.hbm_to_vmem [thread:$0]  %s21_s28, 256, %s23_s8, [#allocation3], %s481_s29, %s481_s29, %s482_s30  }
   0xa   :  { %s48_s12 = sshll.u32 %s484_s1, 4  ;;  %s49_s12 = int_to_ptr.vmem [resolvable:$true] %s48_s12 }
   0xb   :  { %54 = dma.hbm_to_vmem [thread:$0]  %s47_s11, 256, %s49_s12, [#allocation6], %s481_s29, %s481_s29, %s482_s30  }
   0xc   :  { %472 = dma.done.wait [#allocation3], 256  }
   0xd   :  { %473 = vsyncadd [#allocation3], 4294967040 }
   0xe   :  { %474 = dma.done.wait [#allocation6], 512  }
   0xf   :  { %475 = vsyncadd [#allocation6], 4294966784  ;;  %vm77_vm0 = vcmask 261120   ;;  %v74_v0 = vld [vmem:[#allocation5 + $0x8] sm:$0xff]  ;;  %v76_v1 = vld [vmem:[#allocation7 + $0x8] sm:$0xff]  ;;  %vm142_vm1 = vcmask 130048  }
  0x10   :  { %316 = vmatpush.xpose.msk.msra.mxu0 %vm77_vm0, %v74_v0  ;;  %324 = vmatpush.xpose.msk.msra.mxu2 %vm77_vm0, %v74_v0  ;;  %v73_v2 = vld [vmem:[#allocation5] sm:$0xff]  ;;  %v75_v3 = vld [vmem:[#allocation7] sm:$0xff]  ;;  %v72_v5 = vld [vmem:[#allocation2 + $0x8] sm:$0xff]  ;;  %s289_s16 = sshll.u32 %s570_s5, 4  ;;  %vm232_vm10 = vcmask 1041409   ;;  %vm235_vm11 = vcmask 123904   ;;  %s290_s16 = int_to_ptr.hbm [resolvable:$true] %s289_s16 }
  0x11   :  { %320 = vmatpush.xpose.msk.msra.mxu1 %vm77_vm0, %v76_v1  ;;  %326 = vmatpush.xpose.msk.msra.mxu3 %vm77_vm0, %v76_v1  ;;  %v71_v4 = vld [vmem:[#allocation2] sm:$0xff]  ;;  %s300_s21 = sshll.u32 %s571_s6, 4  ;;  %s301_s21 = int_to_ptr.hbm [resolvable:$true] %s300_s21 }
  0x14   :  { %317 = vmatpush.xpose.msk.msra.mxu0 %vm77_vm0, %v73_v2  ;;  %325 = vmatpush.xpose.msk.msra.mxu2 %vm77_vm0, %v73_v2 }
  0x15   :  { %321 = vmatpush.xpose.msk.msra.mxu1 %vm77_vm0, %v75_v3  ;;  %327 = vmatpush.xpose.msk.msra.mxu3 %vm77_vm0, %v75_v3 }
  0x17   :  { %318 = vmatmul.msk.f32.vlgmr.msra.gmra.mxu0 %vm77_vm0, %v71_v4  ;;  %319 = vmatmul.msk.f32.vlgmr.msra.gmra.mxu2 %vm77_vm0, %v72_v5 }
  0x18   :  { %322 = vmatmul.msk.f32.vlgmr.msra.gmra.mxu1 %vm77_vm0, %v71_v4  ;;  %323 = vmatmul.msk.f32.vlgmr.msra.gmra.mxu3 %vm77_vm0, %v72_v5  ;;  %v335_v5 = vld [vmem:[%s568_s3] ss:$0 sm:$0xff]  ;;  %s485_s3 = smov [#allocation8]  }
  0x19   :  { %s287_s13 = sshll.u32 %s485_s3, 4  ;;  %s288_s13 = int_to_ptr.vmem [resolvable:$true] %s287_s13 }
  0x94   :  { %v107_v6 = vpop.f32.mrf.mxu0 }
  0x95   :  { %v143_v7 = vsel %vm142_vm1, %v107_v6, -inf  ;;  %v136_v26 = vpop.f32.mrf.mxu1 }
  0x96   :  { %v144_v8 = vrot.slane %v143_v7, 4 }
  0x98   :  { %v145_v9 = vmax.f32 %v143_v7, %v144_v8 }
  0x9a   :  { %v146_v10 = vrot.slane %v145_v9, 2  ;;  %v110_v11 = vpop.f32.mrf.mxu2 }
  0x9b   :  { %v150_v12 = vsel %vm142_vm1, %v110_v11, -inf  ;;  %v139_v32 = vpop.f32.mrf.mxu3 }
  0x9c   :  { %v147_v13 = vmax.f32 %v145_v9, %v146_v10  ;;  %v151_v14 = vrot.slane %v150_v12, 4 }
  0x9e   :  { %v148_v15 = vrot.slane %v147_v13, 1  ;;  %v152_v16 = vmax.f32 %v150_v12, %v151_v14 }
  0xa0   :  { %v149_v17 = vmax.f32 %v147_v13, %v148_v15  ;;  %v153_v18 = vrot.slane %v152_v16, 2 }
  0xa2   :  { %v157_v19 = vsub.f32 %v107_v6, %v149_v17  ;;  %v154_v20 = vmax.f32 %v152_v16, %v153_v18 }
  0xa4   :  { %v159_v21 = vmul.f32 1.442695, %v157_v19  ;;  %v155_v22 = vrot.slane %v154_v20, 1 }
  0xa6   :  { %336 = vpow2.f32 %v159_v21  ;;  %v156_v23 = vmax.f32 %v154_v20, %v155_v22 }
  0xa8   :  { %v158_v24 = vsub.f32 %v110_v11, %v156_v23 }
  0xaa   :  { %v161_v25 = vmul.f32 1.442695, %v158_v24 }
  0xac   :  { %v337_v27 = vpop.eup %336  ;;  %338 = vpow2.f32 %v161_v25 }
  0xad   :  { %v163_v28 = vsel %vm142_vm1, %v337_v27, 0.0  ;;  %v177_v30 = vmul.f32 %v337_v27, %v136_v26 }
  0xae   :  { %v164_v29 = vrot.slane %v163_v28, 4 }
  0xaf   :  { %v179_v35 = vsel %vm142_vm1, %v177_v30, 0.0 }
  0xb0   :  { %v165_v31 = vadd.f32 %v164_v29, %v163_v28  ;;  %v180_v40 = vrot.slane %v179_v35, 4 }
  0xb2   :  { %v339_v33 = vpop.eup %338  ;;  %v166_v34 = vrot.slane %v165_v31, 2  ;;  %v181_v46 = vadd.f32 %v180_v40, %v179_v35 }
  0xb3   :  { %v170_v36 = vsel %vm142_vm1, %v339_v33, 0.0  ;;  %v178_v37 = vmul.f32 %v339_v33, %v139_v32  ;;  %v237_v33 = vld [vmem:[%s569_s4] sm:$0x3]  ;;  %s486_s4 = smov [#allocation9]  }
  0xb4   :  { %v167_v38 = vadd.f32 %v166_v34, %v165_v31  ;;  %v171_v39 = vrot.slane %v170_v36, 4  ;;  %v182_v50 = vrot.slane %v181_v46, 2  ;;  %s298_s18 = sshll.u32 %s486_s4, 4  ;;  %s299_s18 = int_to_ptr.vmem [resolvable:$true] %s298_s18 }
  0xb5   :  { %v186_v43 = vsel %vm142_vm1, %v178_v37, 0.0 }
  0xb6   :  { %v168_v41 = vrot.slane %v167_v38, 1  ;;  %v172_v42 = vadd.f32 %v171_v39, %v170_v36  ;;  %v187_v48 = vrot.slane %v186_v43, 4  ;;  %v183_v54 = vadd.f32 %v182_v50, %v181_v46 }
  0xb7   :  { %v241_v36 = vrot.slane %v237_v33, 1 }
  0xb8   :  { %v169_v44 = vadd.f32 %v168_v41, %v167_v38  ;;  %v173_v45 = vrot.slane %v172_v42, 2  ;;  %v188_v52 = vadd.f32 %v187_v48, %v186_v43  ;;  %v184_v59 = vrot.slane %v183_v54, 1 }
  0xba   :  { %340 = vrcp.f32 %v169_v44  ;;  %v174_v47 = vadd.f32 %v173_v45, %v172_v42  ;;  %v189_v56 = vrot.slane %v188_v52, 2  ;;  %v204_v58 = vand.u32 2147483648, %v169_v44 }
  0xbb   :  { %v202_v61 = vand.u32 2147483647, %v169_v44  ;;  %vm198_vm3 = vweird.f32 %v169_v44  ;;  %v185_v3 = vadd.f32 %v184_v59, %v183_v54 }
  0xbc   :  { %v175_v49 = vrot.slane %v174_v47, 1  ;;  %v190_v63 = vadd.f32 %v189_v56, %v188_v52  ;;  %v205_v2 = vor.u32 1.1754944e-38, %v204_v58 }
  0xbd   :  { %vm203_vm5 = vcmp.eq.f32.partialorder %v202_v61, 8.507059e+37 }
  0xbe   :  { %v176_v51 = vadd.f32 %v175_v49, %v174_v47  ;;  %v191_v8 = vrot.slane %v190_v63, 1 }
  0xc0   :  { %v341_v53 = vpop.eup %340  ;;  %342 = vrcp.f32 %v176_v51  ;;  %v219_v9 = vand.u32 2147483648, %v176_v51  ;;  %v217_v12 = vand.u32 2147483647, %v176_v51  ;;  %vm213_vm7 = vweird.f32 %v176_v51 }
  0xc1   :  { %v194_v55 = vmul.f32 %v341_v53, %v169_v44  ;;  %vm199_vm2 = vweird.f32 %v341_v53  ;;  %v192_v17 = vadd.f32 %v191_v8, %v190_v63 }
  0xc2   :  { %vm200_vm4 = vmor %vm198_vm3, %vm199_vm2  ;;  %v220_v15 = vor.u32 1.1754944e-38, %v219_v9  ;;  %vm218_vm9 = vcmp.eq.f32.partialorder %v217_v12, 8.507059e+37 }
  0xc3   :  { %v195_v57 = vsub.f32 1.0, %v194_v55 }
  0xc5   :  { %v196_v60 = vmul.f32 %v341_v53, %v195_v57 }
  0xc6   :  { %v343_v62 = vpop.eup %342 }
  0xc7   :  { %v197_v0 = vadd.f32 %v341_v53, %v196_v60  ;;  %v209_v1 = vmul.f32 %v343_v62, %v176_v51  ;;  %vm214_vm6 = vweird.f32 %v343_v62 }
  0xc8   :  { %vm215_vm8 = vmor %vm213_vm7, %vm214_vm6 }
  0xc9   :  { %v201_v4 = vsel %vm200_vm4, %v341_v53, %v197_v0  ;;  %v210_v6 = vsub.f32 1.0, %v209_v1 }
  0xca   :  { %v206_v7 = vsel %vm203_vm5, %v205_v2, %v201_v4 }
  0xcb   :  { %v207_v10 = vmul.f32 %v206_v7, %v185_v3  ;;  %v211_v11 = vmul.f32 %v343_v62, %v210_v6 }
  0xcd   :  { %v227_v13 = vadd.f32 %v335_v5, %v207_v10  ;;  %v212_v14 = vadd.f32 %v343_v62, %v211_v11 }
  0xcf   :  { %v248_v16 = vand.u32 2147483647, %v227_v13  ;;  %v216_v18 = vsel %vm215_vm8, %v343_v62, %v212_v14  ;;  %v238_v46 = vmax.f32 %v227_v13, 0.0  ;;  %v244_v47 = vmul.f32 %v237_v33, %v227_v13 }
  0xd0   :  { %v221_v19 = vsel %vm218_vm9, %v220_v15, %v216_v18 }
  0xd1   :  { %v250_v20 = vsub.f32 0.0, %v248_v16  ;;  %v222_v21 = vmul.f32 %v221_v19, %v192_v17  ;;  %v246_v54 = vsub.f32 %v238_v46, %v244_v47 }
  0xd3   :  { %v252_v22 = vmul.f32 1.442695, %v250_v20  ;;  %v228_v23 = vadd.f32 %v335_v5, %v222_v21 }
  0xd5   :  { %344 = vpow2.f32 %v252_v22  ;;  %v249_v24 = vand.u32 2147483647, %v228_v23  ;;  %v231_v25 = vrot.slane %v228_v23, 7  ;;  %v239_v40 = vmax.f32 %v228_v23, 0.0 }
  0xd6   :  { %v245_v41 = vmul.f32 %v241_v36, %v228_v23 }
  0xd7   :  { %v251_v26 = vsub.f32 0.0, %v249_v24  ;;  %v233_v27 = vsel %vm232_vm10, %v231_v25, %v227_v13 }
  0xd8   :  { %236 = vst.msk [vmem:[#allocation8] sm:$0x3] %vm235_vm11, %v233_v27  ;;  %v247_v51 = vsub.f32 %v239_v40, %v245_v41 }
  0xd9   :  { %v254_v28 = vmul.f32 1.442695, %v251_v26  ;;  %292 = dma.vmem_to_hbm [thread:$0]  %s288_s13, 32, %s290_s16, [#allocation4]  }
  0xdb   :  { %v345_v29 = vpop.eup %344  ;;  %346 = vpow2.f32 %v254_v28 }
  0xdc   :  { %v256_v30 = vadd.f32 1.0, %v345_v29  ;;  %v259_v34 = vmul.f32 -0.5, %v345_v29  ;;  %v262_v42 = vand.u32 2147483647, %v345_v29 }
  0xde   :  { %348 = vlog2.f32 %v256_v30  ;;  %v260_v38 = vadd.f32 1.0, %v259_v34  ;;  %vm263_vm12 = vcmp.lt.f32.partialorder %v262_v42, 0.0004427343 }
  0xe0   :  { %v261_v48 = vmul.f32 %v345_v29, %v260_v38 }
  0xe1   :  { %v347_v31 = vpop.eup %346 }
  0xe2   :  { %v265_v32 = vadd.f32 1.0, %v347_v31  ;;  %v268_v35 = vmul.f32 -0.5, %v347_v31  ;;  %v271_v43 = vand.u32 2147483647, %v347_v31 }
  0xe4   :  { %350 = vlog2.f32 %v265_v32  ;;  %v349_v37 = vpop.eup %348  ;;  %v269_v39 = vadd.f32 1.0, %v268_v35  ;;  %vm272_vm13 = vcmp.lt.f32.partialorder %v271_v43, 0.0004427343 }
  0xe5   :  { %v258_v44 = vmul.f32 0.6931472, %v349_v37 }
  0xe6   :  { %v270_v50 = vmul.f32 %v347_v31, %v269_v39 }
  0xe7   :  { %v264_v52 = vsel %vm263_vm12, %v261_v48, %v258_v44 }
  0xe8   :  { %v274_v56 = vadd.f32 %v264_v52, %v246_v54 }
  0xea   :  { %v351_v45 = vpop.eup %350 }
  0xeb   :  { %v267_v49 = vmul.f32 0.6931472, %v351_v45 }
  0xed   :  { %v273_v53 = vsel %vm272_vm13, %v270_v50, %v267_v49 }
  0xee   :  { %v275_v55 = vadd.f32 %v273_v53, %v247_v51 }
  0xf0   :  { %v278_v57 = vrot.slane %v275_v55, 7 }
  0xf2   :  { %v279_v58 = vsel %vm232_vm10, %v278_v57, %v274_v56 }
  0xf3   :  { %281 = vst.msk [vmem:[#allocation9] sm:$0x3] %vm235_vm11, %v279_v58 }
  0xf4   :  { %303 = dma.vmem_to_hbm [thread:$0]  %s299_s18, 32, %s301_s21, [#allocation10]  }
  0xf5   :  { %476 = dma.done.wait [#allocation4], 32  }
  0xf6   :  { %477 = vsyncadd [#allocation4], 4294967264 }
  0xf7   :  { %478 = dma.done.wait [#allocation10], 32  }
  0xf8   :  { %479 = vsyncadd [#allocation10], 4294967264 }
  0xf9   :  { %312 = vsyncpa [#allocation3], 1 }
  0xfa   :  { %313 = vsyncpa [#allocation6], 1 }
  0xfb   :  { %314 = vsyncpa [#allocation4], 1 }
  0xfc   :  { %315 = vsyncpa [#allocation10], 1 }

</bundles_post_ra>
